<compile_context>
chip_gen: v5e
topology: v5e:2x2
jax: 0.10.0
libtpu: 0.0.40
codegen_flags: <defaults>
</compile_context>

<pallas_src>
import functools
import math

import jax
import jax.numpy as jnp
from jax.experimental import pallas as pl
from jax.experimental.pallas import tpu as pltpu

LANE = 128
_GATHER_ROWS = 8          # rows gathered per grid step in the DMA-gather kernels


def _ru(x, m):
    return ((x + m - 1) // m) * m


def _pad_dim(n):
    """Pad a node-count so _pick_tile never falls back below the preferred tile."""
    if n <= 128:
        return 128
    if n <= 256:
        return 256
    return _ru(n, 512)


def _pick_tile(dim):
    # 512 keeps all three generations (v5e/v6e/v7x) well inside default scoped VMEM.
    # TODO(synk): on v6e (128 MiB VMEM) 1024-wide N tiles + vmem_limit_bytes would push the
    # pure matmuls closer to the MXU roofline; kept at 512 for cross-generation safety.
    for t in (512, 256, 128):
        if dim % t == 0:
            return t
    return dim


def _mosaic_params(semantics):
    return pltpu.CompilerParams(dimension_semantics=semantics)


# ----------------------------------------------------------------------------
# Pallas kernels
# ----------------------------------------------------------------------------
def _mm_scale_kernel(a_ref, b_ref, s_ref, o_ref, acc_ref):
    """out = rowscale * (a @ b), bf16 MXU operands, f32 accumulation, bf16 output.

    Used for the GCN feature transform with the column-side D^-1/2 pre-folded in:
    xw_scaled = D^-1/2 (X @ W).
    """
    @pl.when(pl.program_id(2) == 0)
    def _():
        acc_ref[...] = jnp.zeros_like(acc_ref)

    acc_ref[...] += jnp.dot(a_ref[...].astype(jnp.bfloat16),
                            b_ref[...].astype(jnp.bfloat16),
                            preferred_element_type=jnp.float32)

    @pl.when(pl.program_id(2) == pl.num_programs(2) - 1)
    def _():
        o_ref[...] = (s_ref[...] * acc_ref[...]).astype(o_ref.dtype)


def _gcn_agg_kernel(dr_ref, b_ref, a_ref, xw_ref, o_ref, acc_ref, *, fill, relu):
    """out = D^-1/2 (A + fill*I) D^-1/2 X W + b  with xw == D^-1/2 X W already pre-scaled.

    Per reduction step: one bf16 MXU dot (A is streamed in bf16, no per-step VPU work).
    The self-loop term lands only on i == k tiles (requires tm == tk, asserted by wrapper);
    the row-side D^-1/2, bias and optional ReLU are applied once at finalize.
    """
    i = pl.program_id(0)
    k = pl.program_id(2)

    @pl.when(k == 0)
    def _():
        acc_ref[...] = jnp.zeros_like(acc_ref)

    acc_ref[...] += jnp.dot(a_ref[...], xw_ref[...],
                            preferred_element_type=jnp.float32)

    @pl.when(i == k)
    def _():
        acc_ref[...] += fill * xw_ref[...].astype(jnp.float32)

    @pl.when(k == pl.num_programs(2) - 1)
    def _():
        out = dr_ref[...] * acc_ref[...] + b_ref[...]
        if relu:
            out = jnp.maximum(out, 0.0)
        o_ref[...] = out


def _aug_adj_kernel(aik_ref, akj_ref, aij_ref, o_ref, deg_ref, acc_ref, dacc_ref):
    """augment_adj:  (A + I)^2 with self loops removed  ==  A @ A + 2A with diag zeroed.

    Hot loop is a pure bf16 MXU dot; +2A is added from A's (i,j) tile at finalize and the
    diagonal zeroing only runs on i == j blocks. rowsum(A_aug) is a fused second output
    (feeds the score GCN's normalization with no extra N^2 HBM pass).
    """
    i = pl.program_id(0)
    j = pl.program_id(1)
    k = pl.program_id(2)
    last_k = k == pl.num_programs(2) - 1

    @pl.when(k == 0)
    def _():
        acc_ref[...] = jnp.zeros_like(acc_ref)

    acc_ref[...] += jnp.dot(aik_ref[...], akj_ref[...],
                            preferred_element_type=jnp.float32)

    @pl.when(jnp.logical_and(last_k, j == 0))
    def _():
        dacc_ref[...] = jnp.zeros_like(dacc_ref)

    @pl.when(jnp.logical_and(last_k, i == j))
    def _():
        tile = acc_ref[...] + 2.0 * aij_ref[...].astype(jnp.float32)
        tm, tn = tile.shape
        rr = jax.lax.broadcasted_iota(jnp.int32, (tm, tn), 0)
        cc = jax.lax.broadcasted_iota(jnp.int32, (tm, tn), 1)
        tile = jnp.where(rr == cc, 0.0, tile)        # remove self loops (tm == tn, i == j)
        o_ref[...] = tile.astype(o_ref.dtype)
        dacc_ref[...] += jnp.sum(tile, axis=1, keepdims=True)

    @pl.when(jnp.logical_and(last_k, i != j))
    def _():
        tile = acc_ref[...] + 2.0 * aij_ref[...].astype(jnp.float32)
        o_ref[...] = tile.astype(o_ref.dtype)
        dacc_ref[...] += jnp.sum(tile, axis=1, keepdims=True)

    @pl.when(jnp.logical_and(last_k, j == pl.num_programs(1) - 1))
    def _():
        deg_ref[...] = dacc_ref[...]


def _gather_rows_kernel(perm_ref, scale_ref, src_hbm, o_ref, rs_ref, buf, sems):
    """out[r] = scale[r] * src[perm[r]]   (+ fused rowsum output), 8 rows per grid step.

    src stays in HBM (pl.ANY); each row is fetched with its own async DMA so the copies
    overlap. Padded perm entries point at row 0 and are zeroed via scale == 0.
    """
    base = pl.program_id(0) * _GATHER_ROWS
    for g in range(_GATHER_ROWS):
        pltpu.make_async_copy(src_hbm.at[perm_ref[base + g]],
                              buf.at[g], sems.at[g]).start()
    for g in range(_GATHER_ROWS):
        pltpu.make_async_copy(src_hbm.at[0], buf.at[g], sems.at[g]).wait()
    vals = buf[...].astype(jnp.float32) * scale_ref[...]
    o_ref[...] = vals.astype(o_ref.dtype)
    rs_ref[...] = jnp.sum(vals, axis=1, keepdims=True)


def _gather_add_rows_kernel(idx_ref, res_ref, sel_ref, src_hbm, o_ref, buf, sems):
    """Unpool + residual (sum_res=True):  out[r] = res[r] + sel[r] * src[inv[r]]."""
    base = pl.program_id(0) * _GATHER_ROWS
    for g in range(_GATHER_ROWS):
        pltpu.make_async_copy(src_hbm.at[idx_ref[base + g]],
                              buf.at[g], sems.at[g]).start()
    for g in range(_GATHER_ROWS):
        pltpu.make_async_copy(src_hbm.at[0], buf.at[g], sems.at[g]).wait()
    o_ref[...] = res_ref[...] + sel_ref[...] * buf[...].astype(jnp.float32)


# ----------------------------------------------------------------------------
# pallas_call wrappers (tiled grids + BlockSpecs)
# ----------------------------------------------------------------------------
def matmul_scale(a, b, scale, out_dtype=jnp.bfloat16):
    m, kdim = a.shape
    _, n = b.shape
    tm, tn, tk = _pick_tile(m), _pick_tile(n), _pick_tile(kdim)
    grid = (m // tm, n // tn, kdim // tk)
    return pl.pallas_call(
        _mm_scale_kernel,
        out_shape=jax.ShapeDtypeStruct((m, n), out_dtype),
        grid_spec=pltpu.PrefetchScalarGridSpec(
            num_scalar_prefetch=0, grid=grid,
            in_specs=[pl.BlockSpec((tm, tk), lambda i, j, k: (i, k)),
                      pl.BlockSpec((tk, tn), lambda i, j, k: (k, j)),
                      pl.BlockSpec((tm, 1), lambda i, j, k: (i, 0))],
            out_specs=pl.BlockSpec((tm, tn), lambda i, j, k: (i, j)),
            scratch_shapes=[pltpu.VMEM((tm, tn), jnp.float32)]),
        compiler_params=_mosaic_params(("parallel", "parallel", "arbitrary")),
    )(a, b, scale.reshape(m, 1).astype(jnp.float32))


def gcn_aggregate(A_bf, dinv, xw_bf, b, *, fill, relu):
    n = A_bf.shape[0]
    c = xw_bf.shape[1]
    tm = tk = _pick_tile(n)          # tm == tk required by the pl.when(i == k) diagonal
    tn = _pick_tile(c)
    assert tm == tk
    grid = (n // tm, c // tn, n // tk)
    kernel = functools.partial(_gcn_agg_kernel, fill=float(fill), relu=bool(relu))
    return pl.pallas_call(
        kernel,
        out_shape=jax.ShapeDtypeStruct((n, c), jnp.float32),
        grid_spec=pltpu.PrefetchScalarGridSpec(
            num_scalar_prefetch=0, grid=grid,
            in_specs=[pl.BlockSpec((tm, 1), lambda i, j, k: (i, 0)),    # D^-1/2 (rows)
                      pl.BlockSpec((1, tn), lambda i, j, k: (0, j)),    # bias
                      pl.BlockSpec((tm, tk), lambda i, j, k: (i, k)),   # A (bf16)
                      pl.BlockSpec((tk, tn), lambda i, j, k: (k, j))],  # D^-1/2 X W (bf16)
            out_specs=pl.BlockSpec((tm, tn), lambda i, j, k: (i, j)),
            scratch_shapes=[pltpu.VMEM((tm, tn), jnp.float32)]),
        compiler_params=_mosaic_params(("parallel", "parallel", "arbitrary")),
    )(dinv.reshape(n, 1).astype(jnp.float32), b, A_bf, xw_bf)


def gcn_layer(A_bf, dinv, x, w, b, *, fill, relu):
    """GCNConv: D^-1/2 (A + fill*I) D^-1/2 @ (X W) + b, optional ReLU."""
    xw = matmul_scale(x, w, dinv)                    # bf16  D^-1/2 (X @ W)
    return gcn_aggregate(A_bf, dinv, xw, b, fill=fill, relu=relu)


def augment_adj(A_bf):
    """Returns (A_aug bf16, rowsum(A_aug) f32) with A_aug = (A + I)^2, self loops removed."""
    n = A_bf.shape[0]
    t = _pick_tile(n)
    grid = (n // t, n // t, n // t)
    return pl.pallas_call(
        _aug_adj_kernel,
        out_shape=(jax.ShapeDtypeStruct((n, n), jnp.bfloat16),
                   jax.ShapeDtypeStruct((n, 1), jnp.float32)),
        grid_spec=pltpu.PrefetchScalarGridSpec(
            num_scalar_prefetch=0, grid=grid,
            in_specs=[pl.BlockSpec((t, t), lambda i, j, k: (i, k)),
                      pl.BlockSpec((t, t), lambda i, j, k: (k, j)),
                      pl.BlockSpec((t, t), lambda i, j, k: (i, j))],   # +2A at finalize
            out_specs=(pl.BlockSpec((t, t), lambda i, j, k: (i, j)),
                       pl.BlockSpec((t, 1), lambda i, j, k: (i, 0))),
            scratch_shapes=[pltpu.VMEM((t, t), jnp.float32),
                            pltpu.VMEM((t, 1), jnp.float32)]),
        compiler_params=_mosaic_params(("parallel", "arbitrary", "arbitrary")),
    )(A_bf, A_bf, A_bf)


def row_gather(src, perm, scale):
    """(out, rowsum) with out[r] = scale[r] * src[perm[r]]; scalar-prefetch DMA gather."""
    _, cols = src.shape
    kp = perm.shape[0]
    G = _GATHER_ROWS
    return pl.pallas_call(
        _gather_rows_kernel,
        out_shape=(jax.ShapeDtypeStruct((kp, cols), src.dtype),
                   jax.ShapeDtypeStruct((kp, 1), jnp.float32)),
        grid_spec=pltpu.PrefetchScalarGridSpec(
            num_scalar_prefetch=1, grid=(kp // G,),
            in_specs=[pl.BlockSpec((G, 1), lambda i, perm_ref: (i, 0)),
                      pl.BlockSpec(memory_space=pl.ANY)],
            out_specs=(pl.BlockSpec((G, cols), lambda i, perm_ref: (i, 0)),
                       pl.BlockSpec((G, 1), lambda i, perm_ref: (i, 0))),
            scratch_shapes=[pltpu.VMEM((G, cols), src.dtype),
                            pltpu.SemaphoreType.DMA((G,))]),
        compiler_params=_mosaic_params(("arbitrary",)),
    )(perm, scale.reshape(kp, 1).astype(jnp.float32), src)


def unpool_add(res, h, inv_idx, sel):
    """sum_res=True unpool:  out = res + (up with up[perm] = h), as a DMA gather of h."""
    rows, cols = res.shape
    G = _GATHER_ROWS
    return pl.pallas_call(
        _gather_add_rows_kernel,
        out_shape=jax.ShapeDtypeStruct((rows, cols), jnp.float32),
        grid_spec=pltpu.PrefetchScalarGridSpec(
            num_scalar_prefetch=1, grid=(rows // G,),
            in_specs=[pl.BlockSpec((G, cols), lambda i, idx_ref: (i, 0)),
                      pl.BlockSpec((G, 1), lambda i, idx_ref: (i, 0)),
                      pl.BlockSpec(memory_space=pl.ANY)],
            out_specs=pl.BlockSpec((G, cols), lambda i, idx_ref: (i, 0)),
            scratch_shapes=[pltpu.VMEM((G, cols), h.dtype),
                            pltpu.SemaphoreType.DMA((G,))]),
        compiler_params=_mosaic_params(("arbitrary",)),
    )(inv_idx, res, sel.reshape(rows, 1).astype(jnp.float32), h)


# ----------------------------------------------------------------------------
# Glue (O(N) / O(k) work: degrees, top-k, gating, padding)
# ----------------------------------------------------------------------------
def _dinv_from_deg(deg, fill):
    d = deg.astype(jnp.float32) + fill
    return jnp.where(d > 0.0, jax.lax.rsqrt(d), 0.0)


def _pad_w(w, r, c):
    return jnp.pad(w, ((0, r - w.shape[0]), (0, c - w.shape[1])))


def _pad_b(b, c):
    return jnp.pad(b, (0, c - b.shape[0])).reshape(1, c)


def graph_unet_forward(params, x, A, *, depth, pool_ratio=0.5):
    n_real = x.shape[0]
    in_c = params["down"][0]["w"].shape[0]
    hid_c = params["down"][0]["w"].shape[1]
    out_c = params["up"][-1]["w"].shape[1]
    cin_p, ch_p, cout_p, csc_p = _ru(in_c, LANE), _ru(hid_c, LANE), _ru(out_c, LANE), LANE
    np0 = _pad_dim(n_real)

    xp = jnp.pad(x, ((0, np0 - n_real), (0, cin_p - in_c)))
    Ap = jnp.pad(A, ((0, np0 - n_real), (0, np0 - n_real))).astype(jnp.bfloat16)
    deg0 = jnp.pad(jnp.sum(A, axis=1), (0, np0 - n_real))          # exact f32 degrees

    W_down = [_pad_w(params["down"][0]["w"], cin_p, ch_p)] + \
             [_pad_w(params["down"][i]["w"], ch_p, ch_p) for i in range(1, depth + 1)]
    B_down = [_pad_b(params["down"][i]["b"], ch_p) for i in range(depth + 1)]
    W_pool = [_pad_w(params["pools"][i]["w"], ch_p, csc_p) for i in range(depth)]
    B_pool = [_pad_b(params["pools"][i]["b"], csc_p) for i in range(depth)]
    W_up = [_pad_w(params["up"][i]["w"], ch_p, ch_p if i < depth - 1 else cout_p)
            for i in range(depth)]
    B_up = [_pad_b(params["up"][i]["b"], ch_p if i < depth - 1 else cout_p)
            for i in range(depth)]

    # ---- down path -----------------------------------------------------------------
    dinv = _dinv_from_deg(deg0, 2.0)                 # cached: reused by the matching up conv
    h = gcn_layer(Ap, dinv, xp, W_down[0], B_down[0], fill=2.0, relu=True)

    xs, adjs, dinvs, pools = [h], [Ap], [dinv], []
    A_cur, n_cur = Ap, n_real
    for i in range(1, depth + 1):
        A_aug, deg_aug = augment_adj(A_cur)
        dinv_aug = _dinv_from_deg(deg_aug[:, 0], 1.0)    # fill=1 self loops of the score GCN
        # SAGPooling score GNN (GCNConv(channels, 1), improved=False).
        # TODO(synk): newer torch_geometric defaults SAGPooling's GNN to GraphConv; GCNConv used here.
        score = gcn_layer(A_aug, dinv_aug, h, W_pool[i - 1], B_pool[i - 1],
                          fill=1.0, relu=False)
        s = score[:n_cur, 0]
        k_real = int(math.ceil(pool_ratio * n_cur))
        kp = _pad_dim(k_real)
        # top-k on real nodes only (padding excluded); tanh is monotone so raw score suffices.
        top_s, perm = jax.lax.top_k(s, k_real)
        pad_k = kp - k_real
        perm_pad = jnp.concatenate([perm.astype(jnp.int32),
                                    jnp.zeros((pad_k,), jnp.int32)])      # pad -> row 0 (masked)
        gate = jnp.concatenate([jnp.tanh(top_s), jnp.zeros((pad_k,), jnp.float32)])
        valid = jnp.concatenate([jnp.ones((k_real,), jnp.float32),
                                 jnp.zeros((pad_k,), jnp.float32)])

        # x[perm] * tanh(score[perm])  -- gate fused into the gather, no one-hot matmul.
        h, _ = row_gather(h, perm_pad, gate)
        # A_aug[perm][:, perm] via two row gathers (A_aug symmetric) + fused pooled rowsum.
        Rg, _ = row_gather(A_aug, perm_pad, valid)                        # (kp, N) bf16
        A_cur, deg_pool = row_gather(jnp.transpose(Rg), perm_pad, valid)  # (kp, kp) bf16
        n_cur = k_real

        dinv = _dinv_from_deg(deg_pool[:, 0], 2.0)
        h = gcn_layer(A_cur, dinv, h, W_down[i], B_down[i], fill=2.0, relu=True)
        if i < depth:
            xs.append(h)
            adjs.append(A_cur)
            dinvs.append(dinv)
        pools.append((perm, k_real))

    # ---- up path -------------------------------------------------------------------
    for i in range(depth):
        j = depth - 1 - i
        res, A_j, dinv_j = xs[j], adjs[j], dinvs[j]
        perm, k_real = pools[j]
        rows = res.shape[0]
        inv_idx = jnp.zeros((rows,), jnp.int32).at[perm].set(
            jnp.arange(k_real, dtype=jnp.int32))
        sel = jnp.zeros((rows,), jnp.float32).at[perm].set(1.0)
        h = unpool_add(res, h, inv_idx, sel)                 # res + up (sum_res=True)
        last = (i == depth - 1)
        h = gcn_layer(A_j, dinv_j, h, W_up[i], B_up[i], fill=2.0, relu=not last)

    return h[:n_real, :out_c]


# ----------------------------------------------------------------------------
# Deterministic parameter init (glorot-uniform weights, zero bias)
# ----------------------------------------------------------------------------
def _glorot(key, shape):
    limit = math.sqrt(6.0 / (shape[0] + shape[1]))
    return jax.random.uniform(key, shape, jnp.float32, -limit, limit)


def init_params(key, in_channels, hidden_channels, out_channels, depth):
    params = {"down": [], "pools": [], "up": []}
    keys = iter(jax.random.split(key, 4 * (2 * depth + 1) + 8))
    params["down"].append({"w": _glorot(next(keys), (in_channels, hidden_channels)),
                           "b": jnp.zeros((hidden_channels,), jnp.float32)})
    for _ in range(depth):
        params["pools"].append({"w": _glorot(next(keys), (hidden_channels, 1)),
                                "b": jnp.zeros((1,), jnp.float32)})
        params["down"].append({"w": _glorot(next(keys), (hidden_channels, hidden_channels)),
                               "b": jnp.zeros((hidden_channels,), jnp.float32)})
    for i in range(depth):
        c_out = hidden_channels if i < depth - 1 else out_channels
        params["up"].append({"w": _glorot(next(keys), (hidden_channels, c_out)),
                             "b": jnp.zeros((c_out,), jnp.float32)})
    return params


# ----------------------------------------------------------------------------
# Demo
# ----------------------------------------------------------------------------
if __name__ == "__main__":
    N, IN_C, HID_C, OUT_C, DEPTH = 16, 4, 32, 4, 2

    key = jax.random.PRNGKey(0)
    k_feat, k_param = jax.random.split(key)

    # Node features (N, C_in)
    x = jax.random.normal(k_feat, (N, IN_C), dtype=jnp.float32)

    # Synthetic undirected graph: ring + chords, no self loops, unit edge weights.
    src, dst = [], []
    for i in range(N):
        for j in (i + 1, i + 3):
            a, b = i, j % N
            src += [a, b]
            dst += [b, a]
    A0 = jnp.zeros((N, N), jnp.float32).at[jnp.array(src), jnp.array(dst)].set(1.0)

    params = init_params(k_param, IN_C, HID_C, OUT_C, DEPTH)

    out = graph_unet_forward(params, x, A0, depth=DEPTH, pool_ratio=0.5)
    out = jax.block_until_ready(out)
    assert out.shape == (N, OUT_C) and out.dtype == jnp.float32
    assert bool(jnp.all(jnp.isfinite(out)))
    print("KERNEL_OK")
</pallas_src>

<mosaic_0001>
module attributes {stable_mosaic.version = 11 : i64} {
  func.func @_mm_scale_kernel(%arg0: i32, %arg1: i32, %arg2: i32, %arg3: memref<128x128xf32, #tpu.memory_space<vmem>>, %arg4: memref<128x128xf32, #tpu.memory_space<vmem>>, %arg5: memref<128x1xf32, #tpu.memory_space<vmem>>, %arg6: memref<128x128xbf16, #tpu.memory_space<vmem>>, %arg7: memref<128x128xf32, #tpu.memory_space<vmem>>) attributes {dimension_semantics = [#tpu.dimension_semantics<parallel>, #tpu.dimension_semantics<parallel>, #tpu.dimension_semantics<arbitrary>], iteration_bounds = array<i64: 1, 1, 1>, scalar_prefetch = 0 : i64, scratch_operands = 1 : i64, tpu.core_type = #tpu.core_type<tc>, window_params = [{transform_indices = @transform_0, window_bounds = array<i64: 128, 128>}, {transform_indices = @transform_1, window_bounds = array<i64: 128, 128>}, {transform_indices = @transform_2, window_bounds = array<i64: 128, 1>}, {transform_indices = @transform_3, window_bounds = array<i64: 128, 128>}]} {
    %c0_i32 = arith.constant 0 : i32
    %0 = arith.cmpi eq, %arg2, %c0_i32 : i32
    %1 = arith.extui %0 : i1 to i32
    %c0_i32_0 = arith.constant 0 : i32
    %2 = arith.cmpi ne, %1, %c0_i32_0 : i32
    scf.if %2 {
      %cst_10 = arith.constant 0.000000e+00 : f32
      %14 = vector.broadcast %cst_10 : f32 to vector<128x128xf32>
      %c0_11 = arith.constant 0 : index
      %c0_12 = arith.constant 0 : index
      %15 = vector.load %arg7[%c0_11, %c0_12] : memref<128x128xf32, #tpu.memory_space<vmem>>, vector<128x128xf32>
      tpu.vector_store %arg7[%c0_11, %c0_12], %14 {strides = array<i32>} : memref<128x128xf32, #tpu.memory_space<vmem>>, vector<128x128xf32>,
    } else {
    }
    %c0 = arith.constant 0 : index
    %c0_1 = arith.constant 0 : index
    %3 = vector.load %arg7[%c0, %c0_1] : memref<128x128xf32, #tpu.memory_space<vmem>>, vector<128x128xf32>
    %c0_2 = arith.constant 0 : index
    %c0_3 = arith.constant 0 : index
    %4 = vector.load %arg3[%c0_2, %c0_3] : memref<128x128xf32, #tpu.memory_space<vmem>>, vector<128x128xf32>
    %5 = arith.truncf %4 : vector<128x128xf32> to vector<128x128xbf16>
    %c0_4 = arith.constant 0 : index
    %c0_5 = arith.constant 0 : index
    %6 = vector.load %arg4[%c0_4, %c0_5] : memref<128x128xf32, #tpu.memory_space<vmem>>, vector<128x128xf32>
    %7 = arith.truncf %6 : vector<128x128xf32> to vector<128x128xbf16>
    %cst = arith.constant dense<0.000000e+00> : vector<128x128xf32>
    %8 = tpu.matmul %5, %7, %cst {dimension_numbers = #tpu.dot_dimension_numbers<[1], [0], [0], [1], [0, 0, 1, 1], [], []>} : vector<128x128xbf16>, vector<128x128xbf16>, vector<128x128xf32> -> vector<128x128xf32>
    %9 = arith.addf %3, %8 : vector<128x128xf32>
    %c0_6 = arith.constant 0 : index
    %c0_7 = arith.constant 0 : index
    %10 = vector.load %arg7[%c0_6, %c0_7] : memref<128x128xf32, #tpu.memory_space<vmem>>, vector<128x128xf32>
    tpu.vector_store %arg7[%c0_6, %c0_7], %9 {strides = array<i32>} : memref<128x128xf32, #tpu.memory_space<vmem>>, vector<128x128xf32>,
    %c0_i32_8 = arith.constant 0 : i32
    %11 = arith.cmpi eq, %arg2, %c0_i32_8 : i32
    %12 = arith.extui %11 : i1 to i32
    %c0_i32_9 = arith.constant 0 : i32
    %13 = arith.cmpi ne, %12, %c0_i32_9 : i32
    scf.if %13 {
      %c0_10 = arith.constant 0 : index
      %c0_11 = arith.constant 0 : index
      %14 = vector.load %arg5[%c0_10, %c0_11] : memref<128x1xf32, #tpu.memory_space<vmem>>, vector<128x1xf32>
      %c0_12 = arith.constant 0 : index
      %c0_13 = arith.constant 0 : index
      %15 = vector.load %arg7[%c0_12, %c0_13] : memref<128x128xf32, #tpu.memory_space<vmem>>, vector<128x128xf32>
      %16 = vector.broadcast %14 : vector<128x1xf32> to vector<128x128xf32>
      %17 = arith.mulf %16, %15 : vector<128x128xf32>
      %18 = arith.truncf %17 : vector<128x128xf32> to vector<128x128xbf16>
      %c0_14 = arith.constant 0 : index
      %c0_15 = arith.constant 0 : index
      %19 = vector.load %arg6[%c0_14, %c0_15] : memref<128x128xbf16, #tpu.memory_space<vmem>>, vector<128x128xbf16>
      tpu.vector_store %arg6[%c0_14, %c0_15], %18 {strides = array<i32>} : memref<128x128xbf16, #tpu.memory_space<vmem>>, vector<128x128xbf16>,
    } else {
    }
    return
  }
  func.func @transform_0(%arg0: i32, %arg1: i32, %arg2: i32) -> (i32, i32) {
    %c0_i32 = arith.constant 0 : i32
    return %arg0, %arg2 : i32, i32
  }
  func.func @transform_1(%arg0: i32, %arg1: i32, %arg2: i32) -> (i32, i32) {
    %c0_i32 = arith.constant 0 : i32
    return %arg2, %arg1 : i32, i32
  }
  func.func @transform_2(%arg0: i32, %arg1: i32, %arg2: i32) -> (i32, i32) {
    %c0_i32 = arith.constant 0 : i32
    %c0_i32_0 = arith.constant 0 : i32
    return %arg0, %c0_i32 : i32, i32
  }
  func.func @transform_3(%arg0: i32, %arg1: i32, %arg2: i32) -> (i32, i32) {
    %c0_i32 = arith.constant 0 : i32
    return %arg0, %arg1 : i32, i32
  }
}

</mosaic_0001>

<bundles_post_ra>
// kernel: tpu_custom_call.1
= control target key start
LH: loop header
LB: loop body
LE: loop exit
PB: predicated region body
PF: predicated region fallthrough
CT: control target
= control target key end

     0   :  { %8 = vsyncpa [#allocation4], 0  ;;  %s640_s0 = inlined_call_operand.vmem [shape: f32[128,128], index: 0, kind: input, shape index: {}]   ;;  %s641_s1 = inlined_call_operand.hbm [shape: f32[128,128], index: 1, kind: input, shape index: {}]   ;;  %s642_s2 = inlined_call_operand.vmem [shape: f32[128,1], index: 2, kind: input, shape index: {}]   ;;  %s643_s3 = inlined_call_operand.hbm [shape: bf16[128,128], index: 3, kind: output, shape index: {}]  }
   0x1   :  { %9 = vsyncpa [#allocation5], 0  ;;  %s16_s14 = sshll.u32 %s641_s1, 4  ;;  %s511_s15 = smov [#allocation3]   ;;  %s17_s14 = int_to_ptr.hbm [resolvable:$true] %s16_s14 }
   0x2   :  { %s18_s16 = sshll.u32 %s511_s15, 4  ;;  %s512_s17 = smov 128   ;;  %s19_s16 = int_to_ptr.vmem [resolvable:$true] %s18_s16 }
   0x3   :  { %s513_s18 = smov 8  }
   0x4   :  { %24 = dma.hbm_to_vmem [thread:$0]  %s17_s14, 2048, %s19_s16, [#allocation4], %s512_s17, %s512_s17, %s513_s18  }
   0x5   :  { %507 = dma.done.wait [#allocation4], 2048  }
   0x6   :  { %508 = vsyncadd [#allocation4], 4294965248  ;;  %v514_v0 = vmov 0   ;;  %v199_v1 = vld [vmem:[%s642_s2] sm:$0xff]  ;;  %v105_v2 = vld [vmem:[#allocation3 + $0x70] sm:$0xff]  ;;  %s365_s28 = sshll.u32 %s643_s3, 4  ;;  %s366_s28 = int_to_ptr.hbm [resolvable:$true] %s365_s28 }
   0x7   :  { %456 = vset.pattern.permute.xlu0 %v514_v0  ;;  %457 = vset.pattern.permute.xlu1 %v514_v0  ;;  %v106_v3 = vld [vmem:[#allocation3 + $0x78] sm:$0xff]  ;;  %v103_v5 = vld [vmem:[#allocation3 + $0x60] sm:$0xff]  ;;  %v104_v6 = vld [vmem:[#allocation3 + $0x68] sm:$0xff]  ;;  %s516_s29 = smov 64   ;;  %s517_s30 = smov 4  }
   0x8   :  { %458 = vset.pattern.permute.xlu2 %v514_v0  ;;  %233 = vperm.xlu0 %456, %v199_v1   ;;  %v114_v4 = vpack.c.bf16 %v106_v3, %v105_v2  ;;  %v201_v7 = vld [vmem:[%s642_s2 + $0x10] sm:$0xff]  ;;  %v113_v8 = vpack.c.bf16 %v104_v6, %v103_v5  ;;  %v102_v10 = vld [vmem:[#allocation3 + $0x58] sm:$0xff]  ;;  %v200_v11 = vld [vmem:[%s642_s2 + $0x8] sm:$0xff] }
   0x9   :  { %v101_v9 = vld [vmem:[#allocation3 + $0x50] sm:$0xff]  ;;  %243 = vperm.xlu1 %457, %v201_v7   ;;  %v99_v13 = vld [vmem:[#allocation3 + $0x40] sm:$0xff]  ;;  %v100_v14 = vld [vmem:[#allocation3 + $0x48] sm:$0xff] }
   0xa   :  { %115 = vmatpush.bf16.msra.mxu0 %v114_v4  ;;  %425 = vmatpush.bf16.msra.mxu1 %v114_v4  ;;  %v112_v12 = vpack.c.bf16 %v102_v10, %v101_v9  ;;  %v202_v15 = vld [vmem:[%s642_s2 + $0x18] sm:$0xff]  ;;  %v203_v16 = vld [vmem:[%s642_s2 + $0x20] sm:$0xff]  ;;  %v111_v17 = vpack.c.bf16 %v100_v14, %v99_v13  ;;  %v97_v18 = vld [vmem:[#allocation3 + $0x30] sm:$0xff] }
   0xb   :  { %426 = vmatpush.bf16.msra.mxu2 %v114_v4  ;;  %427 = vmatpush.bf16.msra.mxu3 %v114_v4  ;;  %v98_v19 = vld [vmem:[#allocation3 + $0x38] sm:$0xff]  ;;  %v205_v20 = vld [vmem:[%s642_s2 + $0x30] sm:$0xff]  ;;  %v95_v22 = vld [vmem:[#allocation3 + $0x20] sm:$0xff] }
   0xc   :  { %253 = vperm.xlu2 %458, %v203_v16   ;;  %v110_v21 = vpack.c.bf16 %v98_v19, %v97_v18  ;;  %v96_v23 = vld [vmem:[#allocation3 + $0x28] sm:$0xff]  ;;  %v206_v24 = vld [vmem:[%s642_s2 + $0x38] sm:$0xff]  ;;  %v93_v27 = vld [vmem:[#allocation3 + $0x10] sm:$0xff] }
   0xd   :  { %v204_v25 = vld [vmem:[%s642_s2 + $0x28] sm:$0xff]  ;;  %v109_v26 = vpack.c.bf16 %v96_v23, %v95_v22  ;;  %v94_v28 = vld [vmem:[#allocation3 + $0x18] sm:$0xff]  ;;  %v91_v31 = vld [vmem:[#allocation3] sm:$0xff] }
   0xe   :  { %116 = vmatpush.bf16.msra.mxu0 %v113_v8  ;;  %428 = vmatpush.bf16.msra.mxu1 %v113_v8  ;;  %v208_v29 = vld [vmem:[%s642_s2 + $0x48] sm:$0xff]  ;;  %v108_v30 = vpack.c.bf16 %v94_v28, %v93_v27  ;;  %v67_v33 = vld [vmem:[%s640_s0] sm:$0xff]  ;;  %v209_v35 = vld [vmem:[%s642_s2 + $0x50] sm:$0xff] }
   0xf   :  { %429 = vmatpush.bf16.msra.mxu2 %v113_v8  ;;  %430 = vmatpush.bf16.msra.mxu3 %v113_v8  ;;  %v92_v32 = vld [vmem:[#allocation3 + $0x8] sm:$0xff]  ;;  %v207_v36 = vld [vmem:[%s642_s2 + $0x40] sm:$0xff]  ;;  %v210_v50 = vld [vmem:[%s642_s2 + $0x58] sm:$0xff] }
  0x10   :  { %238 = vperm.xlu0 %456, %v200_v11   ;;  %v68_v34 = vld [vmem:[%s640_s0 + $0x8] sm:$0xff]  ;;  %v107_v37 = vpack.c.bf16 %v92_v32, %v91_v31  ;;  %v71_v38 = vld [vmem:[%s640_s0 + $0x20] sm:$0xff]  ;;  %v214_v51 = vld [vmem:[%s642_s2 + $0x78] sm:$0xff] }
  0x11   :  { %248 = vperm.xlu1 %457, %v202_v15   ;;  %v72_v39 = vld [vmem:[%s640_s0 + $0x28] sm:$0xff]  ;;  %v75_v40 = vld [vmem:[%s640_s0 + $0x40] sm:$0xff]  ;;  %v83_v45 = vpack.c.bf16 %v68_v34, %v67_v33  ;;  %v69_v52 = vld [vmem:[%s640_s0 + $0x10] sm:$0xff] }
  0x12   :  { %117 = vmatpush.bf16.msra.mxu0 %v112_v12  ;;  %431 = vmatpush.bf16.msra.mxu1 %v112_v12  ;;  %v76_v41 = vld [vmem:[%s640_s0 + $0x48] sm:$0xff]  ;;  %v79_v42 = vld [vmem:[%s640_s0 + $0x60] sm:$0xff]  ;;  %v85_v46 = vpack.c.bf16 %v72_v39, %v71_v38  ;;  %v70_v53 = vld [vmem:[%s640_s0 + $0x18] sm:$0xff] }
  0x13   :  { %432 = vmatpush.bf16.msra.mxu2 %v112_v12  ;;  %433 = vmatpush.bf16.msra.mxu3 %v112_v12  ;;  %v80_v43 = vld [vmem:[%s640_s0 + $0x68] sm:$0xff]  ;;  %v211_v44 = vld [vmem:[%s642_s2 + $0x60] sm:$0xff]  ;;  %v87_v47 = vpack.c.bf16 %v76_v41, %v75_v40  ;;  %v213_v54 = vld [vmem:[%s642_s2 + $0x70] sm:$0xff]  ;;  %v84_v61 = vpack.c.bf16 %v70_v53, %v69_v52 }
  0x14   :  { %258 = vperm.xlu2 %458, %v204_v25   ;;  %v89_v48 = vpack.c.bf16 %v80_v43, %v79_v42  ;;  %v212_v49 = vld [vmem:[%s642_s2 + $0x68] sm:$0xff]  ;;  %v73_v55 = vld [vmem:[%s640_s0 + $0x30] sm:$0xff]  ;;  %v74_v56 = vld [vmem:[%s640_s0 + $0x38] sm:$0xff] }
  0x15   :  { %v77_v57 = vld [vmem:[%s640_s0 + $0x50] sm:$0xff]  ;;  %v78_v58 = vld [vmem:[%s640_s0 + $0x58] sm:$0xff]  ;;  %v86_v62 = vpack.c.bf16 %v74_v56, %v73_v55 }
  0x16   :  { %118 = vmatpush.bf16.msra.mxu0 %v111_v17  ;;  %434 = vmatpush.bf16.msra.mxu1 %v111_v17  ;;  %v81_v59 = vld [vmem:[%s640_s0 + $0x70] sm:$0xff]  ;;  %v82_v60 = vld [vmem:[%s640_s0 + $0x78] sm:$0xff]  ;;  %v88_v63 = vpack.c.bf16 %v78_v58, %v77_v57  ;;  %s515_s0 = smov [#allocation6]  }
  0x17   :  { %435 = vmatpush.bf16.msra.mxu2 %v111_v17  ;;  %436 = vmatpush.bf16.msra.mxu3 %v111_v17  ;;  %v90_v0 = vpack.c.bf16 %v82_v60, %v81_v59  ;;  %s363_s25 = sshll.u32 %s515_s0, 4  ;;  %s364_s25 = int_to_ptr.vmem [resolvable:$true] %s363_s25 }
  0x18   :  { %263 = vperm.xlu0 %456, %v205_v20  }
  0x19   :  { %268 = vperm.xlu1 %457, %v206_v24  }
  0x1a   :  { %119 = vmatpush.bf16.msra.mxu0 %v110_v21  ;;  %437 = vmatpush.bf16.msra.mxu1 %v110_v21 }
  0x1b   :  { %438 = vmatpush.bf16.msra.mxu2 %v110_v21  ;;  %439 = vmatpush.bf16.msra.mxu3 %v110_v21 }
  0x1c   :  { %273 = vperm.xlu2 %458, %v207_v36  }
  0x1e   :  { %120 = vmatpush.bf16.msra.mxu0 %v109_v26  ;;  %440 = vmatpush.bf16.msra.mxu1 %v109_v26 }
  0x1f   :  { %441 = vmatpush.bf16.msra.mxu2 %v109_v26  ;;  %442 = vmatpush.bf16.msra.mxu3 %v109_v26 }
  0x20   :  { %278 = vperm.xlu0 %456, %v208_v29  }
  0x21   :  { %283 = vperm.xlu1 %457, %v209_v35  }
  0x22   :  { %121 = vmatpush.bf16.msra.mxu0 %v108_v30  ;;  %443 = vmatpush.bf16.msra.mxu1 %v108_v30 }
  0x23   :  { %444 = vmatpush.bf16.msra.mxu2 %v108_v30  ;;  %445 = vmatpush.bf16.msra.mxu3 %v108_v30 }
  0x24   :  { %288 = vperm.xlu2 %458, %v210_v50  }
  0x26   :  { %122 = vmatpush.bf16.msra.mxu0 %v107_v37  ;;  %446 = vmatpush.bf16.msra.mxu1 %v107_v37 }
  0x27   :  { %447 = vmatpush.bf16.msra.mxu2 %v107_v37  ;;  %448 = vmatpush.bf16.msra.mxu3 %v107_v37 }
  0x28   :  { %293 = vperm.xlu0 %456, %v211_v44  }
  0x29   :  { %123 = vmatmul.bf16.vlgmr.msra.gmra.mxu0 %v83_v45  ;;  %133 = vmatmul.bf16.vlgmr.msra.gmra.mxu1 %v85_v46 }
  0x2a   :  { %143 = vmatmul.bf16.vlgmr.msra.gmra.mxu2 %v87_v47  ;;  %153 = vmatmul.bf16.vlgmr.msra.gmra.mxu3 %v89_v48 }
  0x2b   :  { %298 = vperm.xlu1 %457, %v212_v49  }
  0x2c   :  { %303 = vperm.xlu2 %458, %v213_v54  }
  0x30   :  { %308 = vperm.xlu0 %456, %v214_v51  }
  0x39   :  { %128 = vmatmul.bf16.gmra.mxu0 %v84_v61  ;;  %138 = vmatmul.bf16.gmra.mxu1 %v86_v62 }
  0x3a   :  { %148 = vmatmul.bf16.gmra.mxu2 %v88_v63  ;;  %158 = vmatmul.bf16.gmra.mxu3 %v90_v0 }
  0x66   :  { %v254_v5 = vpop.permute.xlu2 %253 }
  0x6e   :  { %v259_v8 = vpop.permute.xlu2 %258 }
  0x76   :  { %v274_v21 = vpop.permute.xlu2 %273 }
  0x7a   :  { %v234_v1 = vpop.permute.xlu0 %233 }
  0x7b   :  { %v244_v2 = vpop.permute.xlu1 %243 }
  0x7e   :  { %v289_v36 = vpop.permute.xlu2 %288 }
  0x82   :  { %v239_v3 = vpop.permute.xlu0 %238 }
  0x83   :  { %v249_v4 = vpop.permute.xlu1 %248 }
  0x86   :  { %v304_v48 = vpop.permute.xlu2 %303 }
  0x8a   :  { %v264_v6 = vpop.permute.xlu0 %263 }
  0x8b   :  { %v269_v7 = vpop.permute.xlu1 %268 }
  0x92   :  { %v279_v11 = vpop.permute.xlu0 %278 }
  0x93   :  { %v284_v12 = vpop.permute.xlu1 %283 }
  0x9a   :  { %v294_v24 = vpop.permute.xlu0 %293 }
  0x9d   :  { %v299_v25 = vpop.permute.xlu1 %298 }
  0xa2   :  { %v309_v47 = vpop.permute.xlu0 %308 }
  0xa6   :  { %v124_v9 = vpop.f32.mrf.mxu0  ;;  %v134_v10 = vpop.f32.mrf.mxu1 }
  0xa7   :  { %v311_v17 = vmul.f32 %v234_v1, %v124_v9  ;;  %v315_v18 = vmul.f32 %v254_v5, %v134_v10 }
  0xad   :  { %v144_v13 = vpop.f32.mrf.mxu2  ;;  %v154_v14 = vpop.f32.mrf.mxu3 }
  0xae   :  { %v126_v15 = vpop.f32.mrf.mxu0  ;;  %v136_v16 = vpop.f32.mrf.mxu1  ;;  %v319_v28 = vmul.f32 %v274_v21, %v144_v13  ;;  %v323_v29 = vmul.f32 %v294_v24, %v154_v14 }
  0xaf   :  { %v312_v19 = vmul.f32 %v239_v3, %v126_v15  ;;  %v316_v20 = vmul.f32 %v259_v8, %v136_v16 }
  0xb1   :  { %v381_v22 = vpack.c.bf16 %v312_v19, %v311_v17  ;;  %v391_v23 = vpack.c.bf16 %v316_v20, %v315_v18 }
  0xb3   :  { %382 = vst [vmem:[#allocation6] sm:$0xff] %v381_v22  }
  0xb4   :  { %419 = vst [vmem:[#allocation6 + $0x10] sm:$0xff] %v391_v23  }
  0xb5   :  { %v146_v26 = vpop.f32.mrf.mxu2  ;;  %v156_v27 = vpop.f32.mrf.mxu3 }
  0xb6   :  { %v320_v30 = vmul.f32 %v279_v11, %v146_v26  ;;  %v324_v31 = vmul.f32 %v299_v25, %v156_v27  ;;  %v129_v32 = vpop.f32.mrf.mxu0  ;;  %v139_v33 = vpop.f32.mrf.mxu1 }
  0xb7   :  { %v313_v41 = vmul.f32 %v244_v2, %v129_v32  ;;  %v317_v42 = vmul.f32 %v264_v6, %v139_v33 }
  0xb8   :  { %v401_v34 = vpack.c.bf16 %v320_v30, %v319_v28  ;;  %v411_v35 = vpack.c.bf16 %v324_v31, %v323_v29 }
  0xba   :  { %421 = vst [vmem:[#allocation6 + $0x20] sm:$0xff] %v401_v34  }
  0xbb   :  { %423 = vst [vmem:[#allocation6 + $0x30] sm:$0xff] %v411_v35  }
  0xbd   :  { %v149_v37 = vpop.f32.mrf.mxu2  ;;  %v159_v38 = vpop.f32.mrf.mxu3 }
  0xbe   :  { %v131_v39 = vpop.f32.mrf.mxu0  ;;  %v141_v40 = vpop.f32.mrf.mxu1  ;;  %v321_v51 = vmul.f32 %v284_v12, %v149_v37  ;;  %v325_v52 = vmul.f32 %v304_v48, %v159_v38 }
  0xbf   :  { %v314_v43 = vmul.f32 %v249_v4, %v131_v39  ;;  %v318_v44 = vmul.f32 %v269_v7, %v141_v40 }
  0xc1   :  { %v386_v45 = vpack.c.bf16 %v314_v43, %v313_v41  ;;  %v396_v46 = vpack.c.bf16 %v318_v44, %v317_v42 }
  0xc3   :  { %418 = vst [vmem:[#allocation6 + $0x8] sm:$0xff] %v386_v45  }
  0xc4   :  { %420 = vst [vmem:[#allocation6 + $0x18] sm:$0xff] %v396_v46  }
  0xc5   :  { %v151_v49 = vpop.f32.mrf.mxu2  ;;  %v161_v50 = vpop.f32.mrf.mxu3 }
  0xc6   :  { %v322_v53 = vmul.f32 %v289_v36, %v151_v49  ;;  %v326_v54 = vmul.f32 %v309_v47, %v161_v50 }
  0xc8   :  { %v406_v55 = vpack.c.bf16 %v322_v53, %v321_v51  ;;  %v416_v56 = vpack.c.bf16 %v326_v54, %v325_v52 }
  0xca   :  { %422 = vst [vmem:[#allocation6 + $0x28] sm:$0xff] %v406_v55  }
  0xcb   :  { %424 = vst [vmem:[#allocation6 + $0x38] sm:$0xff] %v416_v56  }
  0xcc   :  { %371 = dma.vmem_to_hbm [thread:$0]  %s364_s25, 1024, %s366_s28, [#allocation5], %s516_s29, %s516_s29, %s517_s30  }
  0xcd   :  { %509 = dma.done.wait [#allocation5], 1024  }
  0xce   :  { %510 = vsyncadd [#allocation5], 4294966272 }
  0xcf   :  { %376 = vsyncpa [#allocation4], 1 }
  0xd0   :  { %377 = vsyncpa [#allocation5], 1 }

</bundles_post_ra>
